<compile_context>
chip_gen: v7x
topology: tpu7x:2x2x1
jax: 0.10.0
libtpu: 0.0.40
codegen_flags: <defaults>
</compile_context>

<pallas_src>
import jax
import jax.numpy as jnp
from jax.experimental import pallas as pl
from jax.experimental.pallas import tpu as pltpu

N_INPUTS = 7 * 4      # 28
K_PAD = 32            # padded contraction dim for layer 1
HID = 128
N_ACTIONS = 2
TB_MAX = 1024         # cap on the batch tile


def _round_up(n, m):
    return ((n + m - 1) // m) * m


def _choose_tb(B):
    """Largest batch tile (<= TB_MAX) that still gives >=2 blocks when possible."""
    b16 = _round_up(max(B, 1), 16)
    if b16 <= 16:
        return b16                       # tiny batch: single block
    return min(TB_MAX, _round_up((b16 + 1) // 2, 16))


def _mlp_kernel(x_ref, w1_ref, b1_ref, w2_ref, b2_ref, w3_ref, b3_ref,
                w4_ref, b4_ref, out_ref):
    # Layer 1 (f32; K=32 is tiny -> keeps input-layer fidelity, no x recast).
    h = jnp.dot(x_ref[...], w1_ref[...],
                preferred_element_type=jnp.float32) + b1_ref[...]
    h = jnp.maximum(h, 0.0)

    # Layers 2 & 3: bf16 MXU inputs, f32 accumulation, f32 bias + ReLU.
    h = jnp.dot(h.astype(jnp.bfloat16), w2_ref[...],
                preferred_element_type=jnp.float32) + b2_ref[...]
    h = jnp.maximum(h, 0.0)

    h = jnp.dot(h.astype(jnp.bfloat16), w3_ref[...],
                preferred_element_type=jnp.float32) + b3_ref[...]
    h = jnp.maximum(h, 0.0)

    # Head (f32, 2-wide): tiny (TB, 2) store -> minimal HBM writeback.
    out_ref[...] = jnp.dot(h, w4_ref[...],
                           preferred_element_type=jnp.float32) + b4_ref[...]


def prepare_params(params):
    """One-time cast/pad of the weights into the kernel layout (cache this)."""
    (w1, b1), (w2, b2), (w3, b3), (w4, b4) = params
    w1_p = jnp.zeros((K_PAD, HID), jnp.float32).at[:N_INPUTS, :].set(
        w1.astype(jnp.float32))
    return (
        w1_p,
        jnp.reshape(b1.astype(jnp.float32), (1, HID)),
        w2.astype(jnp.bfloat16),
        jnp.reshape(b2.astype(jnp.float32), (1, HID)),
        w3.astype(jnp.bfloat16),
        jnp.reshape(b3.astype(jnp.float32), (1, HID)),
        w4.astype(jnp.float32),
        jnp.reshape(b4.astype(jnp.float32), (1, N_ACTIONS)),
    )


def network_forward(x, prepared, *, tb=None):
    """Forward pass of Network. x: [B, 28] (any dtype), returns [B, 2] f32."""
    x = x.astype(jnp.float32)            # mirrors `x.type(torch.FloatTensor)`
    B = x.shape[0]
    TB = tb if tb is not None else _choose_tb(B)
    B_pad = _round_up(B, TB)
    num_blocks = B_pad // TB

    # Single pad op per call; no separate bf16 copy of x (cast fused in kernel
    # where needed — here layer 1 is f32, so none at all).
    x_p = jnp.pad(x, ((0, B_pad - B), (0, K_PAD - N_INPUTS)))

    w1_p, b1_f, w2_b, b2_f, w3_b, b3_f, w4_f, b4_f = prepared
    args = (x_p, w1_p, b1_f, w2_b, b2_f, w3_b, b3_f, w4_f, b4_f)

    # Weights/biases stay resident in VMEM across the whole batch grid.
    def resident(a):
        return pl.BlockSpec(a.shape, lambda i: (0,) * a.ndim)

    flops = 2 * B_pad * (K_PAD * HID + 2 * HID * HID + HID * N_ACTIONS)
    bytes_accessed = (sum(int(a.size) * a.dtype.itemsize for a in args)
                      + B_pad * N_ACTIONS * 4)

    out = pl.pallas_call(
        _mlp_kernel,
        out_shape=jax.ShapeDtypeStruct((B_pad, N_ACTIONS), jnp.float32),
        grid_spec=pltpu.PrefetchScalarGridSpec(
            num_scalar_prefetch=0,
            grid=(num_blocks,),
            in_specs=[
                pl.BlockSpec((TB, K_PAD), lambda i: (i, 0)),
                resident(w1_p), resident(b1_f),
                resident(w2_b), resident(b2_f),
                resident(w3_b), resident(b3_f),
                resident(w4_f), resident(b4_f),
            ],
            out_specs=pl.BlockSpec((TB, N_ACTIONS), lambda i: (i, 0)),
        ),
        compiler_params=pltpu.CompilerParams(
            dimension_semantics=("parallel",)),
        cost_estimate=pl.CostEstimate(
            flops=flops, transcendentals=0, bytes_accessed=bytes_accessed),
    )(*args)

    return out[:B]


def init_params(key):
    """Deterministic init matching nn.Linear's default U(-1/sqrt(fan_in), +)."""
    dims = [(N_INPUTS, HID), (HID, HID), (HID, HID), (HID, N_ACTIONS)]
    params = []
    for (fan_in, fan_out) in dims:
        key, kw, kb = jax.random.split(key, 3)
        bound = 1.0 / jnp.sqrt(fan_in)
        w = jax.random.uniform(kw, (fan_in, fan_out), jnp.float32, -bound, bound)
        b = jax.random.uniform(kb, (1, fan_out), jnp.float32, -bound, bound)
        params.append((w, b))
    return params


def reference_forward_f32(x, params):
    """Pure-f32 reference matching the original PyTorch module exactly."""
    h = x.astype(jnp.float32)
    for i, (w, b) in enumerate(params):
        h = h @ w + b
        if i < len(params) - 1:
            h = jnp.maximum(h, 0.0)
    return h


def reference_forward_mixed(x, params):
    """Reference mirroring the kernel's math (f32 layer1/head, bf16 layers 2-3)."""
    (w1, b1), (w2, b2), (w3, b3), (w4, b4) = params
    h = x.astype(jnp.float32)
    h = jnp.maximum(h @ w1 + b1, 0.0)
    h = jnp.maximum(jnp.dot(h.astype(jnp.bfloat16), w2.astype(jnp.bfloat16),
                            preferred_element_type=jnp.float32) + b2, 0.0)
    h = jnp.maximum(jnp.dot(h.astype(jnp.bfloat16), w3.astype(jnp.bfloat16),
                            preferred_element_type=jnp.float32) + b3, 0.0)
    return h @ w4 + b4


if __name__ == "__main__":
    key = jax.random.PRNGKey(0)
    kp, kx, kx2 = jax.random.split(key, 3)
    params = init_params(kp)
    prep = prepare_params(params)          # one-time weight prep (cached)

    # Small DQL-style batch (single block).
    B = 8
    x = jax.random.normal(kx, (B, N_INPUTS), jnp.float32)
    out = jax.block_until_ready(network_forward(x, prep))
    assert out.shape == (B, N_ACTIONS), out.shape
    assert jnp.allclose(out, reference_forward_mixed(x, params),
                        atol=1e-2, rtol=1e-2), "mismatch vs mixed-precision reference"
    assert jnp.allclose(out, reference_forward_f32(x, params),
                        atol=5e-2, rtol=5e-2), "mismatch vs f32 reference"

    # Larger ragged batch: auto-tiling picks TB=32 -> 2 parallel blocks
    # (exercises resident weights, megacore split on v7x, batch padding).
    B2 = 40
    x2 = jax.random.normal(kx2, (B2, N_INPUTS), jnp.float32)
    out2 = jax.block_until_ready(network_forward(x2, prep))
    assert out2.shape == (B2, N_ACTIONS), out2.shape
    assert jnp.allclose(out2, reference_forward_mixed(x2, params),
                        atol=1e-2, rtol=1e-2), "mismatch vs mixed reference (tiled)"
    assert jnp.allclose(out2, reference_forward_f32(x2, params),
                        atol=5e-2, rtol=5e-2), "mismatch vs f32 reference (tiled)"

    print("KERNEL_OK")
</pallas_src>

<mosaic_0001>
module attributes {stable_mosaic.version = 11 : i64} {
  func.func @_mlp_kernel(%arg0: i32, %arg1: memref<16x32xf32, #tpu.memory_space<vmem>>, %arg2: memref<32x128xf32, #tpu.memory_space<vmem>>, %arg3: memref<1x128xf32, #tpu.memory_space<vmem>>, %arg4: memref<128x128xbf16, #tpu.memory_space<vmem>>, %arg5: memref<1x128xf32, #tpu.memory_space<vmem>>, %arg6: memref<128x128xbf16, #tpu.memory_space<vmem>>, %arg7: memref<1x128xf32, #tpu.memory_space<vmem>>, %arg8: memref<128x2xf32, #tpu.memory_space<vmem>>, %arg9: memref<1x2xf32, #tpu.memory_space<vmem>>, %arg10: memref<16x2xf32, #tpu.memory_space<vmem>>) attributes {dimension_semantics = [#tpu.dimension_semantics<parallel>], iteration_bounds = array<i64: 1>, scalar_prefetch = 0 : i64, scratch_operands = 0 : i64, tpu.core_type = #tpu.core_type<tc>, window_params = [{transform_indices = @transform_0, window_bounds = array<i64: 16, 32>}, {pipeline_mode = #tpu.pipeline_mode<synchronous>, transform_indices = @transform_1, window_bounds = array<i64: 32, 128>}, {pipeline_mode = #tpu.pipeline_mode<synchronous>, transform_indices = @transform_2, window_bounds = array<i64: 1, 128>}, {pipeline_mode = #tpu.pipeline_mode<synchronous>, transform_indices = @transform_3, window_bounds = array<i64: 128, 128>}, {pipeline_mode = #tpu.pipeline_mode<synchronous>, transform_indices = @transform_4, window_bounds = array<i64: 1, 128>}, {pipeline_mode = #tpu.pipeline_mode<synchronous>, transform_indices = @transform_5, window_bounds = array<i64: 128, 128>}, {pipeline_mode = #tpu.pipeline_mode<synchronous>, transform_indices = @transform_6, window_bounds = array<i64: 1, 128>}, {pipeline_mode = #tpu.pipeline_mode<synchronous>, transform_indices = @transform_7, window_bounds = array<i64: 128, 2>}, {pipeline_mode = #tpu.pipeline_mode<synchronous>, transform_indices = @transform_8, window_bounds = array<i64: 1, 2>}, {transform_indices = @transform_9, window_bounds = array<i64: 16, 2>}]} {
    %c0 = arith.constant 0 : index
    %c0_0 = arith.constant 0 : index
    %0 = vector.load %arg1[%c0, %c0_0] : memref<16x32xf32, #tpu.memory_space<vmem>>, vector<16x32xf32>
    %c0_1 = arith.constant 0 : index
    %c0_2 = arith.constant 0 : index
    %1 = vector.load %arg2[%c0_1, %c0_2] : memref<32x128xf32, #tpu.memory_space<vmem>>, vector<32x128xf32>
    %cst = arith.constant dense<0.000000e+00> : vector<16x128xf32>
    %2 = tpu.matmul %0, %1, %cst {dimension_numbers = #tpu.dot_dimension_numbers<[1], [0], [0], [1], [0, 0, 1, 1], [], []>} : vector<16x32xf32>, vector<32x128xf32>, vector<16x128xf32> -> vector<16x128xf32>
    %c0_3 = arith.constant 0 : index
    %c0_4 = arith.constant 0 : index
    %3 = vector.load %arg3[%c0_3, %c0_4] : memref<1x128xf32, #tpu.memory_space<vmem>>, vector<1x128xf32>
    %4 = vector.broadcast %3 : vector<1x128xf32> to vector<16x128xf32>
    %5 = arith.addf %2, %4 : vector<16x128xf32>
    %cst_5 = arith.constant 0.000000e+00 : f32
    %6 = vector.broadcast %cst_5 : f32 to vector<16x128xf32>
    %7 = arith.maximumf %5, %6 : vector<16x128xf32>
    %8 = arith.truncf %7 : vector<16x128xf32> to vector<16x128xbf16>
    %c0_6 = arith.constant 0 : index
    %c0_7 = arith.constant 0 : index
    %9 = vector.load %arg4[%c0_6, %c0_7] : memref<128x128xbf16, #tpu.memory_space<vmem>>, vector<128x128xbf16>
    %cst_8 = arith.constant dense<0.000000e+00> : vector<16x128xf32>
    %10 = tpu.matmul %8, %9, %cst_8 {dimension_numbers = #tpu.dot_dimension_numbers<[1], [0], [0], [1], [0, 0, 1, 1], [], []>} : vector<16x128xbf16>, vector<128x128xbf16>, vector<16x128xf32> -> vector<16x128xf32>
    %c0_9 = arith.constant 0 : index
    %c0_10 = arith.constant 0 : index
    %11 = vector.load %arg5[%c0_9, %c0_10] : memref<1x128xf32, #tpu.memory_space<vmem>>, vector<1x128xf32>
    %12 = vector.broadcast %11 : vector<1x128xf32> to vector<16x128xf32>
    %13 = arith.addf %10, %12 : vector<16x128xf32>
    %cst_11 = arith.constant 0.000000e+00 : f32
    %14 = vector.broadcast %cst_11 : f32 to vector<16x128xf32>
    %15 = arith.maximumf %13, %14 : vector<16x128xf32>
    %16 = arith.truncf %15 : vector<16x128xf32> to vector<16x128xbf16>
    %c0_12 = arith.constant 0 : index
    %c0_13 = arith.constant 0 : index
    %17 = vector.load %arg6[%c0_12, %c0_13] : memref<128x128xbf16, #tpu.memory_space<vmem>>, vector<128x128xbf16>
    %cst_14 = arith.constant dense<0.000000e+00> : vector<16x128xf32>
    %18 = tpu.matmul %16, %17, %cst_14 {dimension_numbers = #tpu.dot_dimension_numbers<[1], [0], [0], [1], [0, 0, 1, 1], [], []>} : vector<16x128xbf16>, vector<128x128xbf16>, vector<16x128xf32> -> vector<16x128xf32>
    %c0_15 = arith.constant 0 : index
    %c0_16 = arith.constant 0 : index
    %19 = vector.load %arg7[%c0_15, %c0_16] : memref<1x128xf32, #tpu.memory_space<vmem>>, vector<1x128xf32>
    %20 = vector.broadcast %19 : vector<1x128xf32> to vector<16x128xf32>
    %21 = arith.addf %18, %20 : vector<16x128xf32>
    %cst_17 = arith.constant 0.000000e+00 : f32
    %22 = vector.broadcast %cst_17 : f32 to vector<16x128xf32>
    %23 = arith.maximumf %21, %22 : vector<16x128xf32>
    %c0_18 = arith.constant 0 : index
    %c0_19 = arith.constant 0 : index
    %24 = vector.load %arg8[%c0_18, %c0_19] : memref<128x2xf32, #tpu.memory_space<vmem>>, vector<128x2xf32>
    %cst_20 = arith.constant dense<0.000000e+00> : vector<16x2xf32>
    %25 = tpu.matmul %23, %24, %cst_20 {dimension_numbers = #tpu.dot_dimension_numbers<[1], [0], [0], [1], [0, 0, 1, 1], [], []>} : vector<16x128xf32>, vector<128x2xf32>, vector<16x2xf32> -> vector<16x2xf32>
    %c0_21 = arith.constant 0 : index
    %c0_22 = arith.constant 0 : index
    %26 = vector.load %arg9[%c0_21, %c0_22] : memref<1x2xf32, #tpu.memory_space<vmem>>, vector<1x2xf32>
    %27 = vector.broadcast %26 : vector<1x2xf32> to vector<16x2xf32>
    %28 = arith.addf %25, %27 : vector<16x2xf32>
    %c0_23 = arith.constant 0 : index
    %c0_24 = arith.constant 0 : index
    %29 = vector.load %arg10[%c0_23, %c0_24] : memref<16x2xf32, #tpu.memory_space<vmem>>, vector<16x2xf32>
    tpu.vector_store %arg10[%c0_23, %c0_24], %28 {strides = array<i32>} : memref<16x2xf32, #tpu.memory_space<vmem>>, vector<16x2xf32>,
    return
  }
  func.func @transform_0(%arg0: i32) -> (i32, i32) {
    %c0_i32 = arith.constant 0 : i32
    %c0_i32_0 = arith.constant 0 : i32
    return %arg0, %c0_i32 : i32, i32
  }
  func.func @transform_1(%arg0: i32) -> (i32, i32) {
    %c0_i32 = arith.constant 0 : i32
    %c0_i32_0 = arith.constant 0 : i32
    %c0_i32_1 = arith.constant 0 : i32
    return %c0_i32, %c0_i32_0 : i32, i32
  }
  func.func @transform_2(%arg0: i32) -> (i32, i32) {
    %c0_i32 = arith.constant 0 : i32
    %c0_i32_0 = arith.constant 0 : i32
    %c0_i32_1 = arith.constant 0 : i32
    return %c0_i32, %c0_i32_0 : i32, i32
  }
  func.func @transform_3(%arg0: i32) -> (i32, i32) {
    %c0_i32 = arith.constant 0 : i32
    %c0_i32_0 = arith.constant 0 : i32
    %c0_i32_1 = arith.constant 0 : i32
    return %c0_i32, %c0_i32_0 : i32, i32
  }
  func.func @transform_4(%arg0: i32) -> (i32, i32) {
    %c0_i32 = arith.constant 0 : i32
    %c0_i32_0 = arith.constant 0 : i32
    %c0_i32_1 = arith.constant 0 : i32
    return %c0_i32, %c0_i32_0 : i32, i32
  }
  func.func @transform_5(%arg0: i32) -> (i32, i32) {
    %c0_i32 = arith.constant 0 : i32
    %c0_i32_0 = arith.constant 0 : i32
    %c0_i32_1 = arith.constant 0 : i32
    return %c0_i32, %c0_i32_0 : i32, i32
  }
  func.func @transform_6(%arg0: i32) -> (i32, i32) {
    %c0_i32 = arith.constant 0 : i32
    %c0_i32_0 = arith.constant 0 : i32
    %c0_i32_1 = arith.constant 0 : i32
    return %c0_i32, %c0_i32_0 : i32, i32
  }
  func.func @transform_7(%arg0: i32) -> (i32, i32) {
    %c0_i32 = arith.constant 0 : i32
    %c0_i32_0 = arith.constant 0 : i32
    %c0_i32_1 = arith.constant 0 : i32
    return %c0_i32, %c0_i32_0 : i32, i32
  }
  func.func @transform_8(%arg0: i32) -> (i32, i32) {
    %c0_i32 = arith.constant 0 : i32
    %c0_i32_0 = arith.constant 0 : i32
    %c0_i32_1 = arith.constant 0 : i32
    return %c0_i32, %c0_i32_0 : i32, i32
  }
  func.func @transform_9(%arg0: i32) -> (i32, i32) {
    %c0_i32 = arith.constant 0 : i32
    %c0_i32_0 = arith.constant 0 : i32
    return %arg0, %c0_i32 : i32, i32
  }
}

</mosaic_0001>

<bundles_post_ra>
// kernel: tpu_custom_call.1
= control target key start
LH: loop header
LB: loop body
LE: loop exit
PB: predicated region body
PF: predicated region fallthrough
CT: control target
= control target key end

     0   :  { %14 = vsyncpa [#allocation3], 0  ;;  %s969_s0 = inlined_call_operand.hbm [shape: f32[16,32], index: 0, kind: input, shape index: {}]   ;;  %s970_s1 = inlined_call_operand.hbm [shape: f32[32,128], index: 1, kind: input, shape index: {}]   ;;  %s971_s2 = inlined_call_operand.vmem [shape: f32[1,128], index: 2, kind: input, shape index: {}]   ;;  %s972_s3 = inlined_call_operand.vmem [shape: bf16[128,128], index: 3, kind: input, shape index: {}]   ;;  %s973_s4 = inlined_call_operand.vmem [shape: f32[1,128], index: 4, kind: input, shape index: {}]   ;;  %s974_s5 = inlined_call_operand.vmem [shape: bf16[128,128], index: 5, kind: input, shape index: {}]   ;;  %s975_s6 = inlined_call_operand.vmem [shape: f32[1,128], index: 6, kind: input, shape index: {}]   ;;  %s976_s7 = inlined_call_operand.vmem [shape: f32[128,2], index: 7, kind: input, shape index: {}]   ;;  %s977_s8 = inlined_call_operand.vmem [shape: f32[1,2], index: 8, kind: input, shape index: {}]   ;;  %s978_s9 = inlined_call_operand.vmem [shape: f32[16,2], index: 9, kind: output, shape index: {}]  }
   0x1   :  { %15 = vsyncpa [#allocation5], 0  ;;  %s755_s30 = smov [#allocation2]   ;;  %s707_s13 = scalar_lea.hbm %s969_s0, 256 }
   0x2   :  { %s21_s10 = sshll.u32 %s755_s30, 4  ;;  %p708_p0 = scmp.ne.s32.totalorder %s969_s0, %s707_s13  ;;  %s22_s10 = int_to_ptr.vmem [resolvable:$true] %s21_s10 }
   0x3   :  { %p711_p1 = scmp.lt.u32.totalorder %s707_s13, %s969_s0 }
   0x5   :  { %p713_p2 = pnand %p711_p1, %p708_p0 }
   0x7   :  { %716 = shalt.err (!%p713_p2)
}
   0x8   :  { %s717_s18 = scalar_lea.vmem %s22_s10, 256  ;;  %p722_p4 = scmp.lt.s32.totalorder %s22_s10, %s22_s10 }
   0x9   :  { %p718_p3 = scmp.ne.s32.totalorder %s22_s10, %s717_s18  ;;  %p723_p5 = scmp.lt.s32.totalorder %s717_s18, %s717_s18 }
   0xb   :  { %p724_p6 = por %p723_p5, %p722_p4 }
   0xd   :  { %p725_p7 = pnand %p724_p6, %p718_p3 }
   0xf   :  { %728 = shalt.err (!%p725_p7)
}
  0x10   :  { %s756_s19 = smov 128   ;;  %s757_s20 = smov 8  }
  0x11   :  { %27 = dma.hbm_to_vmem [thread:$0]  %s969_s0, 256, %s22_s10, [#allocation3], %s756_s19, %s756_s19, %s757_s20  }
  0x12   :  { %s758_s23 = smov [#allocation4]   ;;  %s729_s27 = scalar_lea.hbm %s970_s1, 512 }
  0x13   :  { %s33_s24 = sshll.u32 %s758_s23, 4  ;;  %p730_p8 = scmp.ne.s32.totalorder %s970_s1, %s729_s27  ;;  %s34_s24 = int_to_ptr.vmem [resolvable:$true] %s33_s24 }
  0x14   :  { %p733_p9 = scmp.lt.u32.totalorder %s729_s27, %s970_s1 }
  0x16   :  { %p735_p10 = pnand %p733_p9, %p730_p8 }
  0x18   :  { %738 = shalt.err (!%p735_p10)
}
  0x19   :  { %s739_s12 = scalar_lea.vmem %s34_s24, 512  ;;  %p744_p12 = scmp.lt.s32.totalorder %s34_s24, %s34_s24 }
  0x1a   :  { %p740_p11 = scmp.ne.s32.totalorder %s34_s24, %s739_s12  ;;  %p745_p13 = scmp.lt.s32.totalorder %s739_s12, %s739_s12 }
  0x1c   :  { %p746_p0 = por %p745_p13, %p744_p12 }
  0x1e   :  { %p747_p1 = pnand %p746_p0, %p740_p11 }
  0x20   :  { %750 = shalt.err (!%p747_p1)
}
  0x21   :  { %39 = dma.hbm_to_vmem [thread:$0]  %s970_s1, 512, %s34_s24, [#allocation5], %s756_s19, %s756_s19, %s757_s20  }
  0x22   :  { %751 = dma.done.wait [#allocation3], 256  }
  0x23   :  { %752 = vsyncadd [#allocation3], 4294967040 }
  0x24   :  { %753 = dma.done.wait [#allocation5], 512  }
  0x25   :  { %754 = vsyncadd [#allocation5], 4294966784  ;;  %v759_v0 = vmov 0.0   ;;  %vm74_vm0 = vcmask 261120   ;;  %v63_v1 = vld [vmem:[#allocation4] sm:$0xff]  ;;  %v64_v2 = vld [vmem:[#allocation4 + $0x8] sm:$0xff] }
  0x26   :  { %570 = vmatprep.subr.bf16.mxu1 %v759_v0  ;;  %v65_v3 = vld [vmem:[#allocation4 + $0x10] sm:$0xff]  ;;  %v645_v4 = vpack.c.bf16 %v64_v2, %v63_v1  ;;  %v66_v5 = vld [vmem:[#allocation4 + $0x18] sm:$0xff]  ;;  %v693_v11 = vld [vmem:[%s972_s3 + $0x10] sm:$0xff]   ;;  %vm760_vm1 = vmmov 0   ;;  %vm486_vm2 = vcmask 15360  }
  0x27   :  { %v61_v6 = vld [vmem:[#allocation2] sm:$0xff]  ;;  %v649_v7 = vpack.c.bf16 %v66_v5, %v65_v3  ;;  %v692_v9 = vld [vmem:[%s972_s3 + $0x8] sm:$0xff]   ;;  %v694_v12 = vld [vmem:[%s972_s3 + $0x18] sm:$0xff]   ;;  %586 = vmatprep.mubr.msk.bf16.mxu1 %vm760_vm1, %v759_v0 }
  0x28   :  { %567 = vmatprep.mubr.msk.f32.mxu0 %vm74_vm0, %v61_v6  ;;  %v691_v8 = vld [vmem:[%s972_s3] sm:$0xff]   ;;  %646 = vmatprep.subr.bf16.mxu0 %v645_v4  ;;  %v62_v10 = vld [vmem:[#allocation2 + $0x8] sm:$0xff]  ;;  %v697_v15 = vld [vmem:[%s972_s3 + $0x30] sm:$0xff]  }
  0x29   :  { %648 = vmatpush3.bf16.msra.mxu0 %v645_v4  ;;  %571 = vmatpush3.bf16.msra.mxu1 %v691_v8  ;;  %v695_v13 = vld [vmem:[%s972_s3 + $0x20] sm:$0xff]   ;;  %v696_v14 = vld [vmem:[%s972_s3 + $0x28] sm:$0xff]   ;;  %v698_v16 = vld [vmem:[%s972_s3 + $0x38] sm:$0xff]  }
  0x2a   :  { %650 = vmatprep.subr.bf16.mxu0 %v649_v7  ;;  %572 = vmatprep.subr.bf16.mxu1 %v759_v0  ;;  %v699_v17 = vld [vmem:[%s974_s5] sm:$0xff]   ;;  %v700_v18 = vld [vmem:[%s974_s5 + $0x8] sm:$0xff]   ;;  %v701_v19 = vld [vmem:[%s974_s5 + $0x10] sm:$0xff]  }
  0x2b   :  { %v702_v20 = vld [vmem:[%s974_s5 + $0x18] sm:$0xff]   ;;  %v703_v21 = vld [vmem:[%s974_s5 + $0x20] sm:$0xff]   ;;  %v704_v22 = vld [vmem:[%s974_s5 + $0x28] sm:$0xff]  }
  0x2c   :  { %v495_v23 = vld [vmem:[%s971_s2] ss:$0 sm:$0xff]  ;;  %v705_v31 = vld [vmem:[%s974_s5 + $0x30] sm:$0xff]   ;;  %v706_v32 = vld [vmem:[%s974_s5 + $0x38] sm:$0xff]  }
  0x2d   :  { %652 = vmatpush3.bf16.msra.mxu0 %v649_v7  ;;  %573 = vmatpush3.bf16.msra.mxu1 %v692_v9  ;;  %v388_v33 = vld [vmem:[%s976_s7] sm:$0xff]  ;;  %v389_v34 = vld [vmem:[%s976_s7 + $0x8] sm:$0xff]  ;;  %v390_v35 = vld [vmem:[%s976_s7 + $0x10] sm:$0xff] }
  0x2e   :  { %574 = vmatprep.subr.bf16.mxu1 %v759_v0  ;;  %590 = vmatprep.subr.bf16.mxu0 %v759_v0  ;;  %v653_v36 = vpack.c.bf16 %v389_v34, %v388_v33  ;;  %v391_v37 = vld [vmem:[%s976_s7 + $0x18] sm:$0xff]  ;;  %v392_v39 = vld [vmem:[%s976_s7 + $0x20] sm:$0xff]  ;;  %v393_v40 = vld [vmem:[%s976_s7 + $0x28] sm:$0xff] }
  0x2f   :  { %v657_v38 = vpack.c.bf16 %v391_v37, %v390_v35  ;;  %v661_v41 = vpack.c.bf16 %v393_v40, %v392_v39  ;;  %v394_v42 = vld [vmem:[%s976_s7 + $0x30] sm:$0xff]  ;;  %v395_v43 = vld [vmem:[%s976_s7 + $0x38] sm:$0xff]  ;;  %v396_v45 = vld [vmem:[%s976_s7 + $0x40] sm:$0xff] }
  0x30   :  { %568 = vmatmul.mubr.msk.f32.vlgmr.msra.gmra.mrb[0].mxu0 %vm74_vm0, %v62_v10  ;;  %v665_v44 = vpack.c.bf16 %v395_v43, %v394_v42  ;;  %v397_v46 = vld [vmem:[%s976_s7 + $0x48] sm:$0xff]  ;;  %v398_v48 = vld [vmem:[%s976_s7 + $0x50] sm:$0xff]  ;;  %v399_v49 = vld [vmem:[%s976_s7 + $0x58] sm:$0xff] }
  0x31   :  { %575 = vmatpush3.bf16.msra.mxu1 %v693_v11  ;;  %606 = vmatprep.mubr.msk.bf16.mxu0 %vm760_vm1, %v759_v0  ;;  %v669_v47 = vpack.c.bf16 %v397_v46, %v396_v45  ;;  %v673_v50 = vpack.c.bf16 %v399_v49, %v398_v48  ;;  %v400_v51 = vld [vmem:[%s976_s7 + $0x60] sm:$0xff]  ;;  %v401_v52 = vld [vmem:[%s976_s7 + $0x68] sm:$0xff]  ;;  %v403_v1 = vld [vmem:[%s976_s7 + $0x78] sm:$0xff] }
  0x32   :  { %576 = vmatprep.subr.bf16.mxu1 %v759_v0  ;;  %591 = vmatpush3.bf16.msra.mxu0 %v699_v17  ;;  %v677_v53 = vpack.c.bf16 %v401_v52, %v400_v51  ;;  %v498_v54 = vld [vmem:[%s973_s4] ss:$0 sm:$0xff] }
  0x33   :  { %592 = vmatprep.subr.bf16.mxu0 %v759_v0  ;;  %v507_v3 = vld [vmem:[%s975_s6] ss:$0 sm:$0xff] }
  0x35   :  { %577 = vmatpush3.bf16.msra.mxu1 %v694_v12  ;;  %v516_v12 = vld [vmem:[%s977_s8] ss:$0 sm:$0xff] }
  0x36   :  { %578 = vmatprep.subr.bf16.mxu1 %v759_v0  ;;  %593 = vmatpush3.bf16.msra.mxu0 %v700_v18 }
  0x37   :  { %594 = vmatprep.subr.bf16.mxu0 %v759_v0 }
  0x39   :  { %579 = vmatpush3.bf16.msra.mxu1 %v695_v13 }
  0x3a   :  { %580 = vmatprep.subr.bf16.mxu1 %v759_v0  ;;  %595 = vmatpush3.bf16.msra.mxu0 %v701_v19 }
  0x3b   :  { %596 = vmatprep.subr.bf16.mxu0 %v759_v0 }
  0x3d   :  { %581 = vmatpush3.bf16.msra.mxu1 %v696_v14 }
  0x3e   :  { %582 = vmatprep.subr.bf16.mxu1 %v759_v0  ;;  %597 = vmatpush3.bf16.msra.mxu0 %v702_v20 }
  0x3f   :  { %598 = vmatprep.subr.bf16.mxu0 %v759_v0 }
  0x41   :  { %583 = vmatpush3.bf16.msra.mxu1 %v697_v15 }
  0x42   :  { %584 = vmatprep.subr.bf16.mxu1 %v759_v0  ;;  %599 = vmatpush3.bf16.msra.mxu0 %v703_v21 }
  0x43   :  { %600 = vmatprep.subr.bf16.mxu0 %v759_v0 }
  0x45   :  { %585 = vmatpush3.bf16.msra.mxu1 %v698_v16 }
  0x46   :  { %601 = vmatpush3.bf16.msra.mxu0 %v704_v22  ;;  %654 = vmatprep.subr.bf16.mxu1 %v653_v36 }
  0x47   :  { %602 = vmatprep.subr.bf16.mxu0 %v759_v0 }
  0x4a   :  { %603 = vmatpush3.bf16.msra.mxu0 %v705_v31 }
  0x4b   :  { %604 = vmatprep.subr.bf16.mxu0 %v759_v0  ;;  %v402_v0 = vld [vmem:[%s976_s7 + $0x70] sm:$0xff] }
  0x4c   :  { %v681_v2 = vpack.c.bf16 %v403_v1, %v402_v0 }
  0x4e   :  { %605 = vmatpush3.bf16.msra.mxu0 %v706_v32 }
 0x103   :  { %v569_v24 = vpop.f32.mrb[0].mxu0 }
 0x104   :  { %v153_v25 = vadd.f32 %v569_v24, %v495_v23  ;;  %v147_v26 = vpop.f32.mrb[1].mxu0 }
 0x105   :  { %v148_v27 = vadd.f32 %v495_v23, %v147_v26 }
 0x106   :  { %v157_v28 = vmax.f32 %v153_v25, 0.0 }
 0x107   :  { %v156_v29 = vmax.f32 %v148_v27, 0.0 }
 0x109   :  { %v158_v30 = vpack.c.bf16 %v157_v28, %v156_v29 }
 0x10b   :  { %587 = vmatmul.mubr.bf16.vlgmr.msra.gmra.mrb[0].mxu1 %v158_v30 }
 0x10c   :  { %656 = vmatpush3.bf16.msra.mxu1 %v653_v36 }
 0x10d   :  { %658 = vmatprep.subr.bf16.mxu1 %v657_v38 }
 0x110   :  { %660 = vmatpush3.bf16.msra.mxu1 %v657_v38 }
 0x111   :  { %662 = vmatprep.subr.bf16.mxu1 %v661_v41 }
 0x114   :  { %664 = vmatpush3.bf16.msra.mxu1 %v661_v41 }
 0x115   :  { %666 = vmatprep.subr.bf16.mxu1 %v665_v44 }
 0x118   :  { %668 = vmatpush3.bf16.msra.mxu1 %v665_v44 }
 0x119   :  { %670 = vmatprep.subr.bf16.mxu1 %v669_v47 }
 0x11c   :  { %672 = vmatpush3.bf16.msra.mxu1 %v669_v47 }
 0x11d   :  { %674 = vmatprep.subr.bf16.mxu1 %v673_v50 }
 0x120   :  { %676 = vmatpush3.bf16.msra.mxu1 %v673_v50 }
 0x121   :  { %678 = vmatprep.subr.bf16.mxu1 %v677_v53 }
 0x124   :  { %680 = vmatpush3.bf16.msra.mxu1 %v677_v53 }
 0x125   :  { %682 = vmatprep.subr.bf16.mxu1 %v681_v2 }
 0x128   :  { %684 = vmatpush3.bf16.msra.mxu1 %v681_v2 }
 0x1de   :  { %v264_v55 = vpop.f32.mrb[0].mxu1 }
 0x1df   :  { %v265_v56 = vadd.f32 %v498_v54, %v264_v55  ;;  %v588_v57 = vpop.f32.mrb[1].mxu1 }
 0x1e0   :  { %v267_v58 = vpop.f32.mrb[2].mxu1 }
 0x1e1   :  { %v268_v59 = vadd.f32 %v498_v54, %v267_v58  ;;  %v589_v60 = vpop.f32.mrb[3].mxu1  ;;  %v271_v61 = vmax.f32 %v265_v56, 0.0 }
 0x1e3   :  { %v272_v62 = vmax.f32 %v268_v59, 0.0 }
 0x1e5   :  { %v273_v63 = vpack.c.bf16 %v272_v62, %v271_v61 }
 0x1e7   :  { %607 = vmatmul.mubr.bf16.vlgmr.msra.gmra.mrb[4].mxu0 %v273_v63 }
 0x2ba   :  { %v379_v4 = vpop.f32.mrb[4].mxu0 }
 0x2bb   :  { %v380_v5 = vadd.f32 %v507_v3, %v379_v4  ;;  %v608_v6 = vpop.f32.mrb[5].mxu0 }
 0x2bc   :  { %v382_v7 = vpop.f32.mrb[6].mxu0 }
 0x2bd   :  { %v386_v8 = vmax.f32 %v380_v5, 0.0  ;;  %v383_v9 = vadd.f32 %v507_v3, %v382_v7  ;;  %v609_v10 = vpop.f32.mrb[7].mxu0 }
 0x2bf   :  { %v387_v11 = vmax.f32 %v383_v9, 0.0  ;;  %642 = vmatprep.mubr.f32.mxu1 %v386_v8 }
 0x2c1   :  { %643 = vmatmul.mubr.f32.vlgmr.msra.gmra.mrb[4].mxu1 %v387_v11 }
 0x394   :  { %v644_v13 = vpop.f32.mrb[4].mxu1 }
 0x395   :  { %v483_v14 = vadd.f32 %v644_v13, %v516_v12  ;;  %v477_v15 = vpop.f32.mrb[5].mxu1 }
 0x396   :  { %v478_v16 = vadd.f32 %v516_v12, %v477_v15 }
 0x397   :  { %488 = vst.msk [vmem:[%s978_s9 + $0x8] sm:$0xff] %vm486_vm2, %v483_v14 }
 0x398   :  { %487 = vst.msk [vmem:[%s978_s9] sm:$0xff] %vm486_vm2, %v478_v16 }
 0x399   :  { %493 = vsyncpa [#allocation3], 1 }
 0x39a   :  { %494 = vsyncpa [#allocation5], 1 }

</bundles_post_ra>
